<compile_context>
chip_gen: v5e
topology: v5e:2x2
jax: 0.10.0
libtpu: 0.0.40
codegen_flags: <defaults>
</compile_context>

<pallas_src>
import jax
import jax.numpy as jnp
from jax.experimental import pallas as pl
from jax.experimental.pallas import tpu as pltpu  # noqa: F401 (used by the scaled-up grid path)


def _graph_trans_kernel(x_ref, w_ref, adj_ref, o_ref):
    # x_ref:   (B, Nb, Fin)   f32
    # w_ref:   (Fin, Fout)    f32
    # adj_ref: (Ne, Nb)       f32
    # o_ref:   (B*Ne, Fout)   f32  (lane-dense slab; split back to (B, Ne, Fout) in the wrapper)
    B = x_ref.shape[0]

    # norm_trans_adj: softmax(relu(adj)) over the last dim.  Batch-invariant ->
    # computed exactly once per call.  Exact divide (no approx reciprocal).
    a = jnp.maximum(adj_ref[...], 0.0)                                   # (Ne, Nb)
    a = a - jnp.max(a, axis=-1, keepdims=True)
    e = jnp.exp(a)
    p = e / jnp.sum(e, axis=-1, keepdims=True)                           # (Ne, Nb)

    # Adjacency mixing on the VPU: mixed_b[e, f] = sum_n p[e, n] * x[b, n, f].
    # Ne*Nb = 14 broadcast mul-adds plus one sublane (XLU) reduction per batch;
    # a (2, 7) contraction is far too small to justify an MXU op.  B is tiny
    # and static, so a plain Python unroll is fine here (switch to
    # lax.fori_loop(..., unroll=True) or a grid axis if B grows).
    mixed = []
    for b in range(B):
        xb = x_ref[b]                                                    # (Nb, Fin)
        mixed.append(jnp.sum(p[:, :, None] * xb[None, :, :], axis=1))    # (Ne, Fin)
    mixed_flat = jnp.concatenate(mixed, axis=0)                          # (B*Ne, Fin)

    # Single MXU matmul for the feature transform: (B*Ne, Fin) @ (Fin, Fout).
    out = jnp.dot(mixed_flat, w_ref[...], preferred_element_type=jnp.float32)

    # One single-shot store of the whole result slab.
    o_ref[...] = out


def graph_trans_forward(x, weight, adj):
    """x: (B, Nb, Fin), weight: (Fin, Fout), adj: (Ne, Nb) -> (B, Ne, Fout)."""
    B, Nb, Fin = x.shape
    Fin_w, Fout = weight.shape
    Ne, Nb_a = adj.shape
    assert Fin == Fin_w and Nb == Nb_a

    # Whole problem fits trivially in VMEM -> single gridless invocation with
    # full-array blocks (no per-step DMA / pipeline overhead).
    out_flat = pl.pallas_call(
        _graph_trans_kernel,
        out_shape=jax.ShapeDtypeStruct((B * Ne, Fout), jnp.float32),
    )(x, weight, adj)

    # Layout plumbing only: the kernel writes a lane-dense (B*Ne, Fout) slab;
    # split the rows back into (B, Ne) outside the kernel.
    return out_flat.reshape(B, Ne, Fout)


def _reference(x, weight, adj):
    # HIGHEST precision so the reference itself is true-f32 (TPU default einsum
    # precision is much looser than the kernel).
    support = jnp.einsum("bnf,fo->bno", x, weight,
                         precision=jax.lax.Precision.HIGHEST)
    p = jax.nn.softmax(jnp.maximum(adj, 0.0), axis=-1)
    return jnp.einsum("en,bno->beo", p, support,
                      precision=jax.lax.Precision.HIGHEST)


if __name__ == "__main__":
    # Module defaults: begin_nodes=7, end_nodes=2.  Small channel dims.
    B = 2
    begin_nodes = 7
    end_nodes = 2
    in_features = 32
    out_features = 32

    key = jax.random.PRNGKey(0)
    kx, kw, ka = jax.random.split(key, 3)

    x = jax.random.normal(kx, (B, begin_nodes, in_features), dtype=jnp.float32)

    # Deterministic xavier-uniform-like init for weight; small uniform for adj.
    limit = (6.0 / (in_features + out_features)) ** 0.5
    weight = jax.random.uniform(
        kw, (in_features, out_features), dtype=jnp.float32, minval=-limit, maxval=limit
    )
    adj = jax.random.uniform(
        ka, (end_nodes, begin_nodes), dtype=jnp.float32, minval=-1.0, maxval=1.0
    )

    out = graph_trans_forward(x, weight, adj)
    out = jax.block_until_ready(out)

    ref = _reference(x, weight, adj)
    assert out.shape == (B, end_nodes, out_features)
    # Softmax is now exact (no approx reciprocal); the remaining tolerance only
    # covers MXU f32 multi-pass rounding vs. the HIGHEST-precision XLA
    # reference (re-tightened from the previous 1e-3).
    assert jnp.allclose(out, ref, atol=5e-4, rtol=5e-4), float(
        jnp.max(jnp.abs(out - ref))
    )

    # TODO(synk): optional bias / relu / adj_return branches of forward() are not
    # exercised by the module's default flags and are left out of the kernel.

    print("KERNEL_OK")
</pallas_src>

<mosaic_0001>
module attributes {stable_mosaic.version = 11 : i64} {
  func.func @_graph_trans_kernel(%arg0: memref<2x7x32xf32, #tpu.memory_space<vmem>>, %arg1: memref<32x32xf32, #tpu.memory_space<vmem>>, %arg2: memref<2x7xf32, #tpu.memory_space<vmem>>, %arg3: memref<4x32xf32, #tpu.memory_space<vmem>>) attributes {dimension_semantics = [], scalar_prefetch = 0 : i64, scratch_operands = 0 : i64, tpu.core_type = #tpu.core_type<tc>} {
    %c0 = arith.constant 0 : index
    %c0_0 = arith.constant 0 : index
    %0 = vector.load %arg2[%c0, %c0_0] : memref<2x7xf32, #tpu.memory_space<vmem>>, vector<2x7xf32>
    %cst = arith.constant 0.000000e+00 : f32
    %1 = vector.broadcast %cst : f32 to vector<2x7xf32>
    %2 = arith.maximumf %0, %1 : vector<2x7xf32>
    %cst_1 = arith.constant dense<0xFF800000> : vector<2xf32>
    %3 = vector.multi_reduction <maximumf>, %2, %cst_1 [1] : vector<2x7xf32> to vector<2xf32>
    %4 = vector.shape_cast %3 : vector<2xf32> to vector<2x1xf32>
    %5 = vector.broadcast %4 : vector<2x1xf32> to vector<2x7xf32>
    %6 = arith.subf %2, %5 : vector<2x7xf32>
    %7 = math.exp %6 : vector<2x7xf32>
    %cst_2 = arith.constant dense<0.000000e+00> : vector<2xf32>
    %8 = vector.multi_reduction <add>, %7, %cst_2 [1] : vector<2x7xf32> to vector<2xf32>
    %9 = vector.shape_cast %8 : vector<2xf32> to vector<2x1xf32>
    %10 = vector.broadcast %9 : vector<2x1xf32> to vector<2x7xf32>
    %11 = arith.divf %7, %10 : vector<2x7xf32>
    %c0_3 = arith.constant 0 : index
    %c0_4 = arith.constant 0 : index
    %c0_5 = arith.constant 0 : index
    %12 = vector.load %arg0[%c0_3, %c0_4, %c0_5] : memref<2x7x32xf32, #tpu.memory_space<vmem>>, vector<1x7x32xf32>
    %13 = vector.shape_cast %12 : vector<1x7x32xf32> to vector<7x32xf32>
    %14 = vector.shape_cast %11 : vector<2x7xf32> to vector<2x7x1xf32>
    %15 = vector.shape_cast %13 : vector<7x32xf32> to vector<1x7x32xf32>
    %16 = vector.broadcast %14 : vector<2x7x1xf32> to vector<2x7x32xf32>
    %17 = vector.broadcast %15 : vector<1x7x32xf32> to vector<2x7x32xf32>
    %18 = arith.mulf %16, %17 : vector<2x7x32xf32>
    %cst_6 = arith.constant dense<0.000000e+00> : vector<2x32xf32>
    %19 = vector.multi_reduction <add>, %18, %cst_6 [1] : vector<2x7x32xf32> to vector<2x32xf32>
    %c1 = arith.constant 1 : index
    %c0_7 = arith.constant 0 : index
    %c0_8 = arith.constant 0 : index
    %20 = vector.load %arg0[%c1, %c0_7, %c0_8] : memref<2x7x32xf32, #tpu.memory_space<vmem>>, vector<1x7x32xf32>
    %21 = vector.shape_cast %20 : vector<1x7x32xf32> to vector<7x32xf32>
    %22 = vector.shape_cast %11 : vector<2x7xf32> to vector<2x7x1xf32>
    %23 = vector.shape_cast %21 : vector<7x32xf32> to vector<1x7x32xf32>
    %24 = vector.broadcast %22 : vector<2x7x1xf32> to vector<2x7x32xf32>
    %25 = vector.broadcast %23 : vector<1x7x32xf32> to vector<2x7x32xf32>
    %26 = arith.mulf %24, %25 : vector<2x7x32xf32>
    %cst_9 = arith.constant dense<0.000000e+00> : vector<2x32xf32>
    %27 = vector.multi_reduction <add>, %26, %cst_9 [1] : vector<2x7x32xf32> to vector<2x32xf32>
    %28 = tpu.concatenate %19, %27 in 0 : vector<2x32xf32>, vector<2x32xf32> -> vector<4x32xf32>
    %c0_10 = arith.constant 0 : index
    %c0_11 = arith.constant 0 : index
    %29 = vector.load %arg1[%c0_10, %c0_11] : memref<32x32xf32, #tpu.memory_space<vmem>>, vector<32x32xf32>
    %cst_12 = arith.constant dense<0.000000e+00> : vector<4x32xf32>
    %30 = tpu.matmul %28, %29, %cst_12 {dimension_numbers = #tpu.dot_dimension_numbers<[1], [0], [0], [1], [0, 0, 1, 1], [], []>} : vector<4x32xf32>, vector<32x32xf32>, vector<4x32xf32> -> vector<4x32xf32>
    %c0_13 = arith.constant 0 : index
    %c0_14 = arith.constant 0 : index
    %31 = vector.load %arg3[%c0_13, %c0_14] : memref<4x32xf32, #tpu.memory_space<vmem>>, vector<4x32xf32>
    tpu.vector_store %arg3[%c0_13, %c0_14], %30 {strides = array<i32>} : memref<4x32xf32, #tpu.memory_space<vmem>>, vector<4x32xf32>,
    return
  }
}

</mosaic_0001>

<bundles_post_ra>
// kernel: tpu_custom_call.1
= control target key start
LH: loop header
LB: loop body
LE: loop exit
PB: predicated region body
PF: predicated region fallthrough
CT: control target
= control target key end

     0   :  { %8 = vsyncpa [#allocation3], 0  ;;  %s270_s0 = inlined_call_operand.vmem [shape: f32[2,7,32], index: 0, kind: input, shape index: {}]   ;;  %s271_s1 = inlined_call_operand.hbm [shape: f32[32,32], index: 1, kind: input, shape index: {}]   ;;  %s272_s2 = inlined_call_operand.vmem [shape: f32[2,7], index: 2, kind: input, shape index: {}]   ;;  %s273_s3 = inlined_call_operand.hbm [shape: f32[4,32], index: 3, kind: output, shape index: {}]  }
   0x1   :  { %9 = vsyncpa [#allocation4], 0  ;;  %s16_s14 = sshll.u32 %s271_s1, 4  ;;  %s231_s15 = smov [#allocation2]   ;;  %s17_s14 = int_to_ptr.hbm [resolvable:$true] %s16_s14 }
   0x2   :  { %s18_s16 = sshll.u32 %s231_s15, 4  ;;  %s232_s17 = smov 128   ;;  %s19_s16 = int_to_ptr.vmem [resolvable:$true] %s18_s16 }
   0x3   :  { %s233_s18 = smov 8  }
   0x4   :  { %24 = dma.hbm_to_vmem [thread:$0]  %s17_s14, 512, %s19_s16, [#allocation3], %s232_s17, %s232_s17, %s233_s18  }
   0x5   :  { %227 = dma.done.wait [#allocation3], 512  }
   0x6   :  { %228 = vsyncadd [#allocation3], 4294966784  ;;  %v31_v0 = vld [vmem:[%s272_s2] sm:$0x3]  ;;  %vm33_vm0 = vcmask 50176   ;;  %v60_v8 = vlaneseq  ;;  %v123_v24 = vld [vmem:[#allocation2 + $0x18] sm:$0xff] }
   0x7   :  { %v32_v1 = vmax.f32 %v31_v0, 0.0  ;;  %140 = vmatpush.msra.mxu0 %v123_v24  ;;  %v122_v25 = vld [vmem:[#allocation2 + $0x10] sm:$0xff]  ;;  %v121_v26 = vld [vmem:[#allocation2 + $0x8] sm:$0xff]  ;;  %v120_v27 = vld [vmem:[#allocation2] sm:$0xff]  ;;  %vm75_vm5 = vcmask 260096   ;;  %vm110_vm6 = vcmask 1041409  }
   0x8   :  { %v61_v9 = vshrl.u32 %v60_v8, 7  ;;  %v58_v28 = vld [vmem:[%s270_s0] sm:$0x7f]  ;;  %v167_v29 = vld [vmem:[%s270_s0 + $0x8] sm:$0x7f]  ;;  %vm115_vm7 = vcmask 1043459  }
   0x9   :  { %v34_v2 = vsel %vm33_vm0, %v32_v1, -inf  ;;  %141 = vmatpush.msra.mxu0 %v122_v25  ;;  %vm118_vm8 = vcmask 1041408   ;;  %vm124_vm9 = vcmask 261120   ;;  %s234_s0 = smov [#allocation5]   ;;  %s157_s26 = sshll.u32 %s273_s3, 4  ;;  %vm148_vm10 = vcmask 257024   ;;  %s158_s26 = int_to_ptr.hbm [resolvable:$true] %s157_s26 }
   0xa   :  { %35 = vmax.xlane.f32.xlu0 %v34_v2  ;;  %173 = vset.pattern.permute.xlu1 %v61_v9  ;;  %s155_s23 = sshll.u32 %s234_s0, 4  ;;  %s156_s23 = int_to_ptr.vmem [resolvable:$true] %s155_s23 }
   0xb   :  { %174 = vset.pattern.permute.xlu0 %v61_v9  ;;  %142 = vmatpush.msra.mxu0 %v121_v26 }
   0xd   :  { %143 = vmatpush.msra.mxu0 %v120_v27 }
  0x7d   :  { %v36_v3 = vpop.xlane.xlu0 %35 }
  0x7e   :  { %v37_v4 = vsub.f32 %v32_v1, %v36_v3 }
  0x80   :  { %v38_v5 = vmul.f32 1.442695, %v37_v4 }
  0x82   :  { %175 = vpow2.f32 %v38_v5 }
  0x88   :  { %v176_v6 = vpop.eup %175 }
  0x89   :  { %v40_v7 = vsel %vm33_vm0, %v176_v6, 0.0 }
  0x8a   :  { %41 = vadd.xlane.f32.xlu0 %v40_v7 }
  0xfd   :  { %v42_v10 = vpop.xlane.xlu0 %41 }
  0xfe   :  { %177 = vrcp.f32 %v42_v10  ;;  %v54_v14 = vand.u32 2147483648, %v42_v10  ;;  %v52_v16 = vand.u32 2147483647, %v42_v10  ;;  %vm48_vm2 = vweird.f32 %v42_v10 }
 0x100   :  { %v55_v18 = vor.u32 1.1754944e-38, %v54_v14  ;;  %vm53_vm4 = vcmp.eq.f32.partialorder %v52_v16, 8.507059e+37 }
 0x104   :  { %v178_v11 = vpop.eup %177 }
 0x105   :  { %v44_v12 = vmul.f32 %v178_v11, %v42_v10  ;;  %vm49_vm1 = vweird.f32 %v178_v11 }
 0x106   :  { %vm50_vm3 = vmor %vm48_vm2, %vm49_vm1 }
 0x107   :  { %v45_v13 = vsub.f32 1.0, %v44_v12 }
 0x109   :  { %v46_v15 = vmul.f32 %v178_v11, %v45_v13 }
 0x10b   :  { %v47_v17 = vadd.f32 %v178_v11, %v46_v15 }
 0x10d   :  { %v51_v19 = vsel %vm50_vm3, %v178_v11, %v47_v17 }
 0x10e   :  { %v56_v20 = vsel %vm53_vm4, %v55_v18, %v51_v19 }
 0x10f   :  { %v57_v21 = vmul.f32 %v176_v6, %v56_v20 }
 0x111   :  { %v59_v22 = vperm.slane %v57_v21, 0  ;;  %v66_v23 = vperm.slane %v57_v21, 1 }
 0x113   :  { %64 = vperm.xlu1 %173, %v59_v22  }
 0x11b   :  { %71 = vperm.xlu1 %173, %v66_v23  }
 0x185   :  { %v65_v30 = vpop.permute.xlu1 %64 }
 0x186   :  { %v73_v31 = vmul.f32 %v65_v30, %v58_v28  ;;  %v92_v32 = vmul.f32 %v167_v29, %v65_v30 }
 0x188   :  { %v76_v33 = vsel %vm75_vm5, %v73_v31, 0.0  ;;  %v94_v34 = vsel %vm75_vm5, %v92_v32, 0.0 }
 0x189   :  { %v77_v35 = vrot.slane %v76_v33, 4  ;;  %v95_v36 = vrot.slane %v94_v34, 4 }
 0x18b   :  { %v78_v37 = vadd.f32 %v77_v35, %v76_v33  ;;  %v96_v38 = vadd.f32 %v95_v36, %v94_v34 }
 0x18d   :  { %v72_v39 = vpop.permute.xlu1 %71  ;;  %v79_v42 = vrot.slane %v78_v37, 2  ;;  %v97_v43 = vrot.slane %v96_v38, 2 }
 0x18e   :  { %v74_v40 = vmul.f32 %v72_v39, %v58_v28  ;;  %v93_v41 = vmul.f32 %v167_v29, %v72_v39 }
 0x18f   :  { %v80_v48 = vadd.f32 %v79_v42, %v78_v37  ;;  %v98_v49 = vadd.f32 %v97_v43, %v96_v38 }
 0x190   :  { %v83_v44 = vsel %vm75_vm5, %v74_v40, 0.0  ;;  %v101_v45 = vsel %vm75_vm5, %v93_v41, 0.0 }
 0x191   :  { %v84_v46 = vrot.slane %v83_v44, 4  ;;  %v102_v47 = vrot.slane %v101_v45, 4  ;;  %v81_v54 = vrot.slane %v80_v48, 1  ;;  %v99_v55 = vrot.slane %v98_v49, 1 }
 0x193   :  { %v85_v50 = vadd.f32 %v84_v46, %v83_v44  ;;  %v103_v51 = vadd.f32 %v102_v47, %v101_v45  ;;  %v82_v62 = vadd.f32 %v81_v54, %v80_v48  ;;  %v100_v63 = vadd.f32 %v99_v55, %v98_v49 }
 0x195   :  { %v86_v52 = vrot.slane %v85_v50, 2  ;;  %v104_v53 = vrot.slane %v103_v51, 2 }
 0x197   :  { %v87_v56 = vadd.f32 %v86_v52, %v85_v50  ;;  %v105_v57 = vadd.f32 %v104_v53, %v103_v51 }
 0x199   :  { %v88_v58 = vrot.slane %v87_v56, 1  ;;  %v106_v59 = vrot.slane %v105_v57, 1 }
 0x19b   :  { %v89_v60 = vadd.f32 %v88_v58, %v87_v56  ;;  %v107_v61 = vadd.f32 %v106_v59, %v105_v57 }
 0x19d   :  { %v111_v0 = vsel %vm110_vm6, %v89_v60, %v82_v62  ;;  %v116_v1 = vsel %vm115_vm7, %v107_v61, %v100_v63 }
 0x19e   :  { %v119_v2 = vsel %vm118_vm8, %v111_v0, %v116_v1 }
 0x19f   :  { %168 = vmatmul.msk.f32.vlgmr.msra.gmra.mxu0 %vm124_vm9, %v119_v2 }
 0x21c   :  { %v145_v3 = vpop.f32.mrf.mxu0 }
 0x21d   :  { %149 = vst.msk [vmem:[#allocation5] sm:$0xf] %vm148_vm10, %v145_v3 }
 0x21e   :  { %160 = dma.vmem_to_hbm [thread:$0]  %s156_s23, 64, %s158_s26, [#allocation4]  }
 0x21f   :  { %229 = dma.done.wait [#allocation4], 64  }
 0x220   :  { %230 = vsyncadd [#allocation4], 4294967232 }
 0x221   :  { %165 = vsyncpa [#allocation3], 1 }
 0x222   :  { %166 = vsyncpa [#allocation4], 1 }

</bundles_post_ra>
